<compile_context>
chip_gen: v6e
topology: v6e:2x2x1
jax: 0.10.0
libtpu: 0.0.40
codegen_flags: <defaults>
</compile_context>

<pallas_src>
import jax
import jax.numpy as jnp
from jax.experimental import pallas as pl
from jax.experimental.pallas import tpu as pltpu


_M_PAD_MULTIPLE = 8                      # modes padding, independent of batch / TM
_VMEM_BUDGET_BYTES = 12 * 1024 * 1024    # target in-flight VMEM (safe on v5e/v6e/v7x)


def _round_up(a, b):
    return (a + b - 1) // b * b


def _plan_shapes(c_in, c_out, modes1):
    """Static padded shapes shared by weight packing and the forward pass."""
    c_in_p = _round_up(c_in, 8)      # sublane dim of the weight tile
    c_out_p = _round_up(c_out, 64)   # Np = 2*c_out_p is a multiple of 128 (lane-dense out)
    np_ = 2 * c_out_p
    m_pad = _round_up(modes1, _M_PAD_MULTIPLE)   # batch-independent
    return c_in_p, c_out_p, np_, m_pad


def _tensorcores_per_chip():
    """Best-effort TensorCores-per-chip (v7x/v5p/v4: 2, v5e/v6e: 1). Defaults to 2."""
    try:
        kind = jax.devices()[0].device_kind.lower()
    except Exception:
        return 2
    if any(tag in kind for tag in ("v5 lite", "v5e", "v6 lite", "v6e", "v6")):
        return 1
    return 2


def pack_spectral_weights(weights1, dtype=jnp.bfloat16):
    """Pre-pack complex64 weights (Cin, Cout, modes1) into the mode-major,
    channel-padded [wr | wi] slab of shape (M_pad, Cin_p, 2*Cout_p).

    Done once per parameter update, NOT in the forward hot path. bf16 by default:
    halves the dominant (weight) HBM stream; the kernel upcasts to f32 before the
    matmul so accumulation stays in f32.
    """
    c_in, c_out, modes1 = weights1.shape
    c_in_p, c_out_p, np_, m_pad = _plan_shapes(c_in, c_out, modes1)
    del np_
    w_m = jnp.transpose(weights1, (2, 0, 1))                    # (M, Cin, Cout) complex
    pad = ((0, m_pad - modes1), (0, c_in_p - c_in), (0, c_out_p - c_out))
    wr = jnp.pad(jnp.real(w_m).astype(jnp.float32), pad)        # (M_pad, Cin_p, Cout_p)
    wi = jnp.pad(jnp.imag(w_m).astype(jnp.float32), pad)
    return jnp.concatenate([wr, wi], axis=-1).astype(dtype)     # (M_pad, Cin_p, 2*Cout_p)


def _spectral_kernel(c_out_p):
    dn = (((2,), (1,)), ((0,), (0,)))   # contract Cin_p, batch over the TM modes

    def kernel(xr_ref, xi_ref, w_ref, o_ref):
        # xr/xi: (TM, B, Cin_p) f32; w: (TM, Cin_p, Np) with Np = 2*Cout_p = [wr | wi].
        w = w_ref[...].astype(jnp.float32)   # cheap VPU upcast; HBM stream stays bf16
        t_r = jax.lax.dot_general(xr_ref[...], w, dn, preferred_element_type=jnp.float32)
        t_i = jax.lax.dot_general(xi_ref[...], w, dn, preferred_element_type=jnp.float32)
        # t_r = [xr.wr | xr.wi], t_i = [xi.wr | xi.wi]. Swap t_i's lane halves
        # (XLU roll; Np == 2*c_out_p so roll direction is irrelevant) and negate the
        # first half:  out = [xr.wr - xi.wi | xr.wi + xi.wr] = [out_re | out_im].
        t_i = pltpu.roll(t_i, shift=c_out_p, axis=2)
        lane = jax.lax.broadcasted_iota(jnp.int32, t_i.shape, 2)
        o_ref[...] = t_r + jnp.where(lane < c_out_p, -t_i, t_i)

    return kernel


def _choose_tm(m_pad, bytes_per_mode, min_steps):
    """Largest divisor of m_pad whose in-flight VMEM fits the budget and that
    leaves at least `min_steps` grid steps."""
    cap = max(1, _VMEM_BUDGET_BYTES // max(1, bytes_per_mode))
    cap = min(cap, max(1, m_pad // min_steps))
    tm = 1
    for d in range(1, m_pad + 1):
        if m_pad % d == 0 and d <= cap:
            tm = d
    return tm


def spectral_conv1d(x, w_packed, modes1, out_channels):
    """SpectralConv1d forward.

    x        : float32 (B, C_in, N)
    w_packed : (M_pad, Cin_p, 2*Cout_p) from pack_spectral_weights (bf16 or f32)
    Returns float32 (B, out_channels, N).
    """
    batch, c_in, n = x.shape
    c_in_p, c_out_p, np_, m_pad = _plan_shapes(c_in, out_channels, modes1)
    assert w_packed.shape == (m_pad, c_in_p, np_), (w_packed.shape, (m_pad, c_in_p, np_))

    # --- FFT (plain JAX) + mode-major re/im split of the kept modes -----------
    x_ft = jnp.fft.rfft(x, axis=-1)                         # (B, Cin, N//2+1) complex64
    xm = jnp.transpose(x_ft[:, :, :modes1], (2, 0, 1))      # (M, B, Cin)
    pad = ((0, m_pad - modes1), (0, 0), (0, c_in_p - c_in))
    xr = jnp.pad(jnp.real(xm), pad)                         # (M_pad, B, Cin_p) f32
    xi = jnp.pad(jnp.imag(xm), pad)

    # --- tiling: TM modes per grid step (chip-safe, divisor of M_pad) ---------
    w_bytes = jnp.dtype(w_packed.dtype).itemsize
    io_per_mode = 2 * (2 * 4 * batch * c_in_p              # xr + xi (double-buffered)
                       + w_bytes * c_in_p * np_            # [wr | wi] slab
                       + 4 * batch * np_)                  # output
    tmp_per_mode = 4 * c_in_p * np_ + 2 * 4 * batch * np_  # in-kernel f32 temporaries
    bytes_per_mode = io_per_mode + tmp_per_mode
    min_steps = 2 if (_tensorcores_per_chip() >= 2 and modes1 >= 2) else 1
    tm = _choose_tm(m_pad, bytes_per_mode, min_steps)
    num_blocks = m_pad // tm
    vmem_limit = int(min(30 * 1024 * 1024,
                         max(8 * 1024 * 1024, 2 * tm * bytes_per_mode)))

    flops = 2 * 2 * m_pad * batch * c_in_p * np_
    bytes_accessed = (2 * 4 * m_pad * batch * c_in_p
                      + w_bytes * m_pad * c_in_p * np_
                      + 4 * m_pad * batch * np_)

    out_pack = pl.pallas_call(
        _spectral_kernel(c_out_p),
        out_shape=jax.ShapeDtypeStruct((m_pad, batch, np_), jnp.float32),
        grid_spec=pltpu.PrefetchScalarGridSpec(
            num_scalar_prefetch=0,
            grid=(num_blocks,),
            in_specs=[
                pl.BlockSpec((tm, batch, c_in_p), lambda m: (m, 0, 0)),
                pl.BlockSpec((tm, batch, c_in_p), lambda m: (m, 0, 0)),
                pl.BlockSpec((tm, c_in_p, np_), lambda m: (m, 0, 0)),
            ],
            out_specs=pl.BlockSpec((tm, batch, np_), lambda m: (m, 0, 0)),
        ),
        compiler_params=pltpu.CompilerParams(
            dimension_semantics=("parallel",),
            vmem_limit_bytes=vmem_limit,
        ),
        cost_estimate=pl.CostEstimate(
            flops=flops, transcendentals=0, bytes_accessed=bytes_accessed),
    )(xr, xi, w_packed)

    # --- unpack lane halves, recombine, zero-pad spectrum, inverse FFT --------
    out_re = out_pack[:modes1, :, :out_channels]                     # (M, B, Cout)
    out_im = out_pack[:modes1, :, c_out_p:c_out_p + out_channels]    # (M, B, Cout)
    out_modes = jnp.transpose(jax.lax.complex(out_re, out_im), (1, 2, 0))  # (B, Cout, M)
    out_ft = jnp.pad(out_modes, ((0, 0), (0, 0), (0, n // 2 + 1 - modes1)))
    return jnp.fft.irfft(out_ft, n=n, axis=-1)                       # (B, Cout, N)


if __name__ == "__main__":
    # Small deterministic example consistent with the module.
    batch, in_channels, out_channels, n_grid, modes1 = 2, 4, 4, 16, 4

    key = jax.random.PRNGKey(0)
    kx, kwr, kwi = jax.random.split(key, 3)

    x = jax.random.normal(kx, (batch, in_channels, n_grid), dtype=jnp.float32)

    # Mirrors: scale * torch.rand(in, out, modes1, dtype=cfloat)
    scale = 1.0 / (in_channels * out_channels)
    w_re = scale * jax.random.uniform(kwr, (in_channels, out_channels, modes1),
                                      dtype=jnp.float32)
    w_im = scale * jax.random.uniform(kwi, (in_channels, out_channels, modes1),
                                      dtype=jnp.float32)
    weights1 = (w_re + 1j * w_im).astype(jnp.complex64)

    # Weight re-layout + bf16 quantization hoisted out of the forward hot path.
    w_packed = jax.block_until_ready(pack_spectral_weights(weights1))

    fwd = jax.jit(spectral_conv1d, static_argnums=(2, 3))
    out = jax.block_until_ready(fwd(x, w_packed, modes1, out_channels))

    # Sanity check against a pure-JAX reference that uses the same bf16-quantized
    # weights the kernel consumes, isolating kernel correctness from the
    # (deliberate) weight quantization.
    w_re_q = w_re.astype(jnp.bfloat16).astype(jnp.float32)
    w_im_q = w_im.astype(jnp.bfloat16).astype(jnp.float32)
    weights_q = (w_re_q + 1j * w_im_q).astype(jnp.complex64)
    x_ft = jnp.fft.rfft(x, axis=-1)
    ref_modes = jnp.einsum('bix,iox->box', x_ft[:, :, :modes1], weights_q)
    ref_ft = jnp.zeros((batch, out_channels, n_grid // 2 + 1), dtype=jnp.complex64)
    ref_ft = ref_ft.at[:, :, :modes1].set(ref_modes)
    ref = jnp.fft.irfft(ref_ft, n=n_grid, axis=-1)

    assert out.shape == (batch, out_channels, n_grid)
    assert jnp.allclose(out, ref, atol=1e-4, rtol=1e-4)

    print("KERNEL_OK")
</pallas_src>

<mosaic_0001>
module attributes {stable_mosaic.version = 11 : i64} {
  func.func @kernel(%arg0: i32, %arg1: memref<4x2x8xf32, #tpu.memory_space<vmem>>, %arg2: memref<4x2x8xf32, #tpu.memory_space<vmem>>, %arg3: memref<4x8x128xbf16, #tpu.memory_space<vmem>>, %arg4: memref<4x2x128xf32, #tpu.memory_space<vmem>>) attributes {dimension_semantics = [#tpu.dimension_semantics<parallel>], iteration_bounds = array<i64: 2>, scalar_prefetch = 0 : i64, scratch_operands = 0 : i64, tpu.core_type = #tpu.core_type<tc>, window_params = [{transform_indices = @transform_0, window_bounds = array<i64: 4, 2, 8>}, {transform_indices = @transform_1, window_bounds = array<i64: 4, 2, 8>}, {transform_indices = @transform_2, window_bounds = array<i64: 4, 8, 128>}, {transform_indices = @transform_3, window_bounds = array<i64: 4, 2, 128>}]} {
    %c0 = arith.constant 0 : index
    %c0_0 = arith.constant 0 : index
    %c0_1 = arith.constant 0 : index
    %0 = vector.load %arg3[%c0, %c0_0, %c0_1] : memref<4x8x128xbf16, #tpu.memory_space<vmem>>, vector<4x8x128xbf16>
    %1 = arith.extf %0 : vector<4x8x128xbf16> to vector<4x8x128xf32>
    %c0_2 = arith.constant 0 : index
    %c0_3 = arith.constant 0 : index
    %c0_4 = arith.constant 0 : index
    %2 = vector.load %arg1[%c0_2, %c0_3, %c0_4] : memref<4x2x8xf32, #tpu.memory_space<vmem>>, vector<4x2x8xf32>
    %cst = arith.constant dense<0.000000e+00> : vector<4x2x128xf32>
    %3 = tpu.matmul %2, %1, %cst {dimension_numbers = #tpu.dot_dimension_numbers<[2], [1], [1], [2], [0, 0, 0, 1, 1, 2], [0], [0]>} : vector<4x2x8xf32>, vector<4x8x128xf32>, vector<4x2x128xf32> -> vector<4x2x128xf32>
    %c0_5 = arith.constant 0 : index
    %c0_6 = arith.constant 0 : index
    %c0_7 = arith.constant 0 : index
    %4 = vector.load %arg2[%c0_5, %c0_6, %c0_7] : memref<4x2x8xf32, #tpu.memory_space<vmem>>, vector<4x2x8xf32>
    %cst_8 = arith.constant dense<0.000000e+00> : vector<4x2x128xf32>
    %5 = tpu.matmul %4, %1, %cst_8 {dimension_numbers = #tpu.dot_dimension_numbers<[2], [1], [1], [2], [0, 0, 0, 1, 1, 2], [0], [0]>} : vector<4x2x8xf32>, vector<4x8x128xf32>, vector<4x2x128xf32> -> vector<4x2x128xf32>
    %c64_i32 = arith.constant 64 : i32
    %6 = tpu.dynamic_rotate %5 by %c64_i32 dim 2 : vector<4x2x128xf32>, i32 -> vector<4x2x128xf32>
    %7 = tpu.iota {dimensions = array<i32: 2>} : vector<4x2x128xi32>
    %c64_i32_9 = arith.constant 64 : i32
    %8 = vector.broadcast %c64_i32_9 : i32 to vector<4x2x128xi32>
    %9 = arith.cmpi slt, %7, %8 : vector<4x2x128xi32>
    %cst_10 = arith.constant 0.000000e+00 : f32
    %10 = vector.broadcast %cst_10 : f32 to vector<4x2x128xf32>
    %11 = arith.subf %10, %6 : vector<4x2x128xf32>
    %12 = arith.select %9, %11, %6 : vector<4x2x128xi1>, vector<4x2x128xf32>
    %13 = arith.addf %3, %12 : vector<4x2x128xf32>
    %c0_11 = arith.constant 0 : index
    %c0_12 = arith.constant 0 : index
    %c0_13 = arith.constant 0 : index
    %14 = vector.load %arg4[%c0_11, %c0_12, %c0_13] : memref<4x2x128xf32, #tpu.memory_space<vmem>>, vector<4x2x128xf32>
    tpu.vector_store %arg4[%c0_11, %c0_12, %c0_13], %13 {strides = array<i32>} : memref<4x2x128xf32, #tpu.memory_space<vmem>>, vector<4x2x128xf32>,
    return
  }
  func.func @transform_0(%arg0: i32) -> (i32, i32, i32) {
    %c0_i32 = arith.constant 0 : i32
    %c0_i32_0 = arith.constant 0 : i32
    %c0_i32_1 = arith.constant 0 : i32
    return %arg0, %c0_i32, %c0_i32_0 : i32, i32, i32
  }
  func.func @transform_1(%arg0: i32) -> (i32, i32, i32) {
    %c0_i32 = arith.constant 0 : i32
    %c0_i32_0 = arith.constant 0 : i32
    %c0_i32_1 = arith.constant 0 : i32
    return %arg0, %c0_i32, %c0_i32_0 : i32, i32, i32
  }
  func.func @transform_2(%arg0: i32) -> (i32, i32, i32) {
    %c0_i32 = arith.constant 0 : i32
    %c0_i32_0 = arith.constant 0 : i32
    %c0_i32_1 = arith.constant 0 : i32
    return %arg0, %c0_i32, %c0_i32_0 : i32, i32, i32
  }
  func.func @transform_3(%arg0: i32) -> (i32, i32, i32) {
    %c0_i32 = arith.constant 0 : i32
    %c0_i32_0 = arith.constant 0 : i32
    %c0_i32_1 = arith.constant 0 : i32
    return %arg0, %c0_i32, %c0_i32_0 : i32, i32, i32
  }
}

</mosaic_0001>

<bundles_post_ra>
// kernel: reverse.1
= control target key start
LH: loop header
LB: loop body
LE: loop exit
PB: predicated region body
PF: predicated region fallthrough
CT: control target
= control target key end

     0   :  { %s92_s0 = inlined_call_operand.vmem [shape: f32[2,4,7], index: 0, kind: input, shape index: {}]   ;;  %s93_s1 = inlined_call_operand.vmem [shape: f32[2,4,7], index: 1, kind: output, shape index: {}]  }
   0x1   :  { %v28_v0 = vld [vmem:[%s92_s0 + $0xc] sm:$0x3]  ;;  %v29_v1 = vld [vmem:[%s92_s0 + $0xa] sm:$0x3]  ;;  %v31_v2 = vld [vmem:[%s92_s0 + $0x8] sm:$0x3] }
   0x2   :  { %4 = vst [vmem:[%s93_s1] sm:$0x3] %v28_v0  ;;  %30 = vst [vmem:[%s93_s1 + $0x2] sm:$0x3] %v29_v1  ;;  %v33_v3 = vld [vmem:[%s92_s0 + $0x6] sm:$0x3] }
   0x3   :  { %32 = vst [vmem:[%s93_s1 + $0x4] sm:$0x3] %v31_v2  ;;  %v35_v4 = vld [vmem:[%s92_s0 + $0x4] sm:$0x3]  ;;  %v37_v5 = vld [vmem:[%s92_s0 + $0x2] sm:$0x3] }
   0x4   :  { %34 = vst [vmem:[%s93_s1 + $0x6] sm:$0x3] %v33_v3  ;;  %36 = vst [vmem:[%s93_s1 + $0x8] sm:$0x3] %v35_v4  ;;  %v25_v6 = vld [vmem:[%s92_s0] sm:$0x3] }
   0x5   :  { %38 = vst [vmem:[%s93_s1 + $0xa] sm:$0x3] %v37_v5  ;;  %39 = vst [vmem:[%s93_s1 + $0xc] sm:$0x3] %v25_v6 }

// kernel: spectral_conv1d.1
= control target key start
LH: loop header
LB: loop body
LE: loop exit
PB: predicated region body
PF: predicated region fallthrough
CT: control target
= control target key end

     0   :  { %s1052_s12 = smov 0   ;;  %s1100_s0 = inlined_call_operand.vmem [shape: f32[8,2,8], index: 0, kind: input, shape index: {}]   ;;  %s1101_s1 = inlined_call_operand.vmem [shape: f32[8,2,8], index: 1, kind: input, shape index: {}]   ;;  %s1102_s2 = inlined_call_operand.vmem [shape: bf16[8,8,128], index: 2, kind: input, shape index: {}]   ;;  %s1103_s3 = inlined_call_operand.vmem [shape: f32[8,2,128], index: 3, kind: output, shape index: {}]  }
   0x1 LB: > { %s922_s13 = sadd.s32 4294967295, %s1027_s12   ;;  %p926_p0 = scmp.ge.s32.totalorder %s1027_s12, 1  ;;  %s1027_s12 = sphi %s1052_s12, %s13_s12  }
   0x2   : > { %p160_p1 = scmp.lt.s32.totalorder %s1027_s12, 3 }
   0x4   : > { %p161_p2 = pnand %p926_p0, %p160_p1 }
   0x5   : > { %s927_s14 = sshll.u32 (!%p161_p2), %s922_s13, 2  ;;  %s1031_s26 = smov (!%p161_p2), 64  }
   0x6   : > { %164 = sbr.rel (%p161_p2) target bundleno = 340 (0x154), region = 32  ;;  %p195_p3 = scmp.lt.s32.totalorder (!%p161_p2), %s927_s14, 7 }
   0xb   : > { %v1029_v0 = vmov 0.0   ;;  %vm1030_vm0 = vmmov 0   ;;  %s1105_s14 = smov (!%p195_p3, %s927_s14), 7  ;;  %vm234_vm1 = vcmask 64512   ;;  %v535_v31 = vlaneseq }
   0xc   : > { %970 = vmatprep.subr.mxu0 %v1029_v0  ;;  %972 = vmatprep.mubr.msk.f32.mxu0 %vm1030_vm0, %v1029_v0  ;;  %s1062_s15 = sshll.u32 %s1105_s14, 1  ;;  %s932_s16 = sshll.u32 %s1105_s14, 2 }
   0xd   : > { %975 = vmatprep.subr.mxu1 %v1029_v0  ;;  %977 = vmatprep.mubr.msk.f32.mxu1 %vm1030_vm0, %v1029_v0  ;;  %s210_s19 = scalar_lea.vmem %s1102_s2, %s932_s16  ;;  %s204_s22 = scalar_lea.vmem %s1101_s1, %s1062_s15  ;;  %v536_v32 = vand.u32 127, %v535_v31 }
   0xe   : > { %v946_v1 = vld [vmem:[%s210_s19] sm:$0xff]   ;;  %v953_v2 = vld [vmem:[%s210_s19 + $0x8] sm:$0xff]   ;;  %s198_s25 = scalar_lea.vmem %s1100_s0, %s1062_s15  ;;  %s216_s29 = scalar_lea.vmem %s1103_s3, %s1062_s15 }
   0xf   : > { %v947_v3 = vunpack.c.l.bf16 %v946_v1  ;;  %v951_v4 = vunpack.c.l.bf16 %v953_v2  ;;  %v230_v5 = vld [vmem:[%s204_s22] sm:$0x3]  ;;  %v948_v6 = vunpack.c.h.bf16 %v946_v1  ;;  %v231_v7 = vld [vmem:[%s204_s22 + $0x2] sm:$0x3]  ;;  %v952_v8 = vunpack.c.h.bf16 %v953_v2  ;;  %v232_v9 = vld [vmem:[%s204_s22 + $0x4] sm:$0x3] }
  0x10   : > { %v233_v10 = vld [vmem:[%s204_s22 + $0x6] sm:$0x3]  ;;  %v226_v11 = vld [vmem:[%s198_s25] sm:$0x3]  ;;  %v227_v12 = vld [vmem:[%s198_s25 + $0x2] sm:$0x3] }
  0x11   : > { %971 = vmatpush3.msra.mxu0 %v947_v3  ;;  %976 = vmatpush3.msra.mxu1 %v948_v6  ;;  %v228_v13 = vld [vmem:[%s198_s25 + $0x4] sm:$0x3]  ;;  %v229_v14 = vld [vmem:[%s198_s25 + $0x6] sm:$0x3]  ;;  %vm537_vm2 = vcmp.lt.s32.totalorder %v536_v32, 64 }
  0x12   : > { %973 = vmatmul.mubr.msk.f32.vlgmr.msra.gmra.mxu0 %vm234_vm1, %v230_v5  ;;  %980 = vmatprep.subr.mxu0 %v1029_v0 }
  0x13   : > { %981 = vmatpush3.msra.mxu0 %v951_v4  ;;  %978 = vmatmul.mubr.msk.f32.vlgmr.msra.gmra.mxu1 %vm234_vm1, %v231_v7 }
  0x14   : > { %982 = vmatprep.mubr.msk.f32.mxu0 %vm1030_vm0, %v1029_v0  ;;  %985 = vmatprep.subr.mxu1 %v1029_v0 }
  0x15   : > { %986 = vmatpush3.msra.mxu1 %v952_v8  ;;  %987 = vmatprep.mubr.msk.f32.mxu1 %vm1030_vm0, %v1029_v0 }
  0x16   : > { %983 = vmatmul.mubr.msk.f32.vlgmr.msra.gmra.mxu0 %vm234_vm1, %v232_v9  ;;  %990 = vmatprep.subr.mxu0 %v1029_v0 }
  0x17   : > { %988 = vmatmul.mubr.msk.f32.vlgmr.msra.gmra.mxu1 %vm234_vm1, %v233_v10  ;;  %991 = vmatpush3.msra.mxu0 %v947_v3 }
  0x18   : > { %992 = vmatprep.mubr.msk.f32.mxu0 %vm1030_vm0, %v1029_v0  ;;  %995 = vmatprep.subr.mxu1 %v1029_v0 }
  0x19   : > { %996 = vmatpush3.msra.mxu1 %v948_v6  ;;  %997 = vmatprep.mubr.msk.f32.mxu1 %vm1030_vm0, %v1029_v0 }
  0x1a   : > { %993 = vmatmul.mubr.msk.f32.vlgmr.msra.gmra.mxu0 %vm234_vm1, %v226_v11  ;;  %1000 = vmatprep.subr.mxu0 %v1029_v0 }
  0x1b   : > { %998 = vmatmul.mubr.msk.f32.vlgmr.msra.gmra.mxu1 %vm234_vm1, %v227_v12  ;;  %1001 = vmatpush3.msra.mxu0 %v951_v4 }
  0x1c   : > { %1002 = vmatprep.mubr.msk.f32.mxu0 %vm1030_vm0, %v1029_v0  ;;  %1005 = vmatprep.subr.mxu1 %v1029_v0 }
  0x1d   : > { %1006 = vmatpush3.msra.mxu1 %v952_v8  ;;  %1007 = vmatprep.mubr.msk.f32.mxu1 %vm1030_vm0, %v1029_v0 }
  0x1e   : > { %1003 = vmatmul.mubr.msk.f32.vlgmr.msra.gmra.mxu0 %vm234_vm1, %v228_v13 }
  0x1f   : > { %1008 = vmatmul.mubr.msk.f32.vlgmr.msra.gmra.mxu1 %vm234_vm1, %v229_v14 }
  0xd2   : > { %v304_v15 = vpop.f32.mrf.mxu0 }
  0xd3   : > { %527 = vrot.lane.b32.xlu0 %v304_v15, %s1031_s26  ;;  %v377_v16 = vpop.f32.mrf.mxu1 }
  0xd4   : > { %v974_v17 = vpop.f32.mrf.mxu0 }
  0xd5   : > { %v979_v18 = vpop.f32.mrf.mxu1 }
  0xd6   : > { %v450_v19 = vpop.f32.mrf.mxu0 }
  0xd7   : > { %529 = vrot.lane.b32.xlu0 %v377_v16, %s1031_s26  ;;  %531 = vrot.lane.b32.xlu1 %v450_v19, %s1031_s26  ;;  %v523_v20 = vpop.f32.mrf.mxu1 }
  0xd8   : > { %v984_v21 = vpop.f32.mrf.mxu0 }
  0xd9   : > { %v989_v22 = vpop.f32.mrf.mxu1 }
  0xda   : > { %v615_v23 = vpop.f32.mrf.mxu0 }
  0xdb   : > { %533 = vrot.lane.b32.xlu1 %v523_v20, %s1031_s26  ;;  %v688_v24 = vpop.f32.mrf.mxu1 }
  0xdc   : > { %v994_v25 = vpop.f32.mrf.mxu0 }
  0xdd   : > { %v999_v26 = vpop.f32.mrf.mxu1 }
  0xde   : > { %v761_v27 = vpop.f32.mrf.mxu0 }
  0xdf   : > { %v834_v28 = vpop.f32.mrf.mxu1 }
  0xe0   : > { %v1004_v29 = vpop.f32.mrf.mxu0 }
  0xe1   : > { %v1009_v30 = vpop.f32.mrf.mxu1 }
 0x145   : > { %v528_v33 = vpop.permute.xlu0 %527 }
 0x146   : > { %v538_v34 = vsub.f32 0.0, %v528_v33 }
 0x148   : > { %v542_v35 = vsel %vm537_vm2, %v538_v34, %v528_v33 }
 0x149   : > { %v616_v36 = vadd.f32 %v615_v23, %v542_v35  ;;  %v530_v37 = vpop.permute.xlu0 %529  ;;  %v532_v38 = vpop.permute.xlu1 %531 }
 0x14a   : > { %v539_v39 = vsub.f32 0.0, %v530_v37  ;;  %v540_v40 = vsub.f32 0.0, %v532_v38 }
 0x14b   : > { %838 = vst [vmem:[%s216_s29] sm:$0x3] %v616_v36 }
 0x14c   : > { %v543_v41 = vsel %vm537_vm2, %v539_v39, %v530_v37  ;;  %v544_v42 = vsel %vm537_vm2, %v540_v40, %v532_v38 }
 0x14d   : > { %v689_v43 = vadd.f32 %v688_v24, %v543_v41  ;;  %v762_v44 = vadd.f32 %v761_v27, %v544_v42  ;;  %v534_v45 = vpop.permute.xlu1 %533 }
 0x14e   : > { %v541_v46 = vsub.f32 0.0, %v534_v45 }
 0x14f   : > { %839 = vst [vmem:[%s216_s29 + $0x2] sm:$0x3] %v689_v43  ;;  %840 = vst [vmem:[%s216_s29 + $0x4] sm:$0x3] %v762_v44 }
 0x150   : > { %v545_v47 = vsel %vm537_vm2, %v541_v46, %v534_v45 }
 0x151   : > { %v835_v48 = vadd.f32 %v834_v28, %v545_v47 }
 0x153   : > { %841 = vst [vmem:[%s216_s29 + $0x6] sm:$0x3] %v835_v48 }
 0x154 PF: > { %s13_s12 = sadd.s32 1, %s1027_s12  }
 0x155   : > { %p10_p4 = scmp.ge.s32.totalorder %s13_s12, 4  }
 0x157   :  { %12 = sbr.rel (!%p10_p4) target bundleno = 1 (0x1), region = 68 }

</bundles_post_ra>
